<compile_context>
chip_gen: v6e
topology: v6e:2x2x1
jax: 0.10.0
libtpu: 0.0.40
codegen_flags: <defaults>
</compile_context>

<pallas_src>
import jax
import jax.numpy as jnp
from jax import lax
from jax.experimental import pallas as pl
from jax.experimental.pallas import tpu as pltpu


def _round_up(x, m):
    return (x + m - 1) // m * m


# ---------------------------------------------------------------------------
# Fused (A @ W) + per-channel shift + ReLU kernel (BN scale folded into W).
# ---------------------------------------------------------------------------
def _matmul_shift_relu_kernel(a_ref, w_ref, shift_ref, o_ref, acc_ref):
    @pl.when(pl.program_id(2) == 0)
    def _init():
        acc_ref[...] = jnp.zeros_like(acc_ref)

    acc_ref[...] += jnp.dot(a_ref[...], w_ref[...],
                            preferred_element_type=jnp.float32)

    @pl.when(pl.program_id(2) == pl.num_programs(2) - 1)
    def _epilogue():
        y = acc_ref[...] + shift_ref[...]          # f32 epilogue (v5e-safe)
        o_ref[...] = jnp.maximum(y, 0.0).astype(o_ref.dtype)


def fused_matmul_shift_relu(a, w, shift):
    """relu(a @ w + shift).  a:(M,K), w:(K,C), shift:(C,).  Returns (M,C) f32."""
    M, K = a.shape
    K2, C = w.shape
    assert K == K2 and shift.shape == (C,)

    # Tile selection: lane-dense Cout, MXU-friendly K/M, v7x-safe VMEM budget.
    C_pad = _round_up(C, 128)
    tn = 256 if C_pad % 256 == 0 else 128
    tm = 256 if M > 256 else _round_up(M, 16)
    M_pad = _round_up(M, tm)
    tk = 512 if K > 512 else _round_up(K, 128)
    K_pad = _round_up(K, tk)

    # Zero-pad (padding contributes zero to the dot; padded rows/cols sliced off).
    a_p = jnp.pad(a.astype(jnp.bfloat16), ((0, M_pad - M), (0, K_pad - K)))
    w_p = jnp.pad(w.astype(jnp.bfloat16), ((0, K_pad - K), (0, C_pad - C)))
    s_p = jnp.pad(shift.astype(jnp.float32), (0, C_pad - C)).reshape(1, C_pad)

    grid = (M_pad // tm, C_pad // tn, K_pad // tk)
    cost = pl.CostEstimate(
        flops=2 * M_pad * K_pad * C_pad,
        transcendentals=0,
        bytes_accessed=a_p.size * 2 + w_p.size * 2 + M_pad * C_pad * 4,
    )

    out = pl.pallas_call(
        _matmul_shift_relu_kernel,
        out_shape=jax.ShapeDtypeStruct((M_pad, C_pad), jnp.float32),
        grid_spec=pltpu.PrefetchScalarGridSpec(
            num_scalar_prefetch=0,
            grid=grid,
            in_specs=[
                pl.BlockSpec((tm, tk), lambda i, j, k: (i, k)),
                pl.BlockSpec((tk, tn), lambda i, j, k: (k, j)),
                pl.BlockSpec((1, tn), lambda i, j, k: (0, j)),
            ],
            out_specs=pl.BlockSpec((tm, tn), lambda i, j, k: (i, j)),
            scratch_shapes=[pltpu.VMEM((tm, tn), jnp.float32)],
        ),
        compiler_params=pltpu.CompilerParams(
            dimension_semantics=("parallel", "parallel", "arbitrary")),
        cost_estimate=cost,
    )(a_p, w_p, s_p)
    return out[:M, :C]


# ---------------------------------------------------------------------------
# Glue: NHWC im2col (pure slicing, no FLOPs), BN folding, layer wrappers
# ---------------------------------------------------------------------------
def _im2col_nhwc(x, kh, kw, stride, pad):
    """x: (N, H, W, C) -> cols: (N*Ho*Wo, kh*kw*C), column order (kh, kw, C)."""
    if pad > 0:
        x = jnp.pad(x, ((0, 0), (pad, pad), (pad, pad), (0, 0)))
    N, H, W, C = x.shape
    Ho = (H - kh) // stride + 1
    Wo = (W - kw) // stride + 1
    patches = []
    for i in range(kh):
        for j in range(kw):
            patches.append(
                x[:, i:i + (Ho - 1) * stride + 1:stride,
                     j:j + (Wo - 1) * stride + 1:stride, :])
    cols = jnp.concatenate(patches, axis=-1)           # (N, Ho, Wo, kh*kw*C)
    return cols.reshape(N * Ho * Wo, kh * kw * C), (N, Ho, Wo)


def _fold_bn(gamma, beta, rmean, rvar, eps=1e-5):
    scale = gamma / jnp.sqrt(rvar + eps)
    shift = beta - rmean * scale
    return scale, shift


def conv_bn_relu(x_nhwc, layer):
    w = layer["w"]                                      # (Cout, Cin, kh, kw) OIHW
    cout, cin, kh, kw = w.shape
    cols, (N, Ho, Wo) = _im2col_nhwc(x_nhwc, kh, kw, layer["stride"], layer["pad"])
    scale, shift = _fold_bn(*layer["bn"])
    wmat = jnp.transpose(w, (2, 3, 1, 0)).reshape(kh * kw * cin, cout)
    wmat = wmat * scale[None, :]                        # fold BN scale into weights
    out = fused_matmul_shift_relu(cols, wmat, shift)    # (N*Ho*Wo, Cout)
    return out.reshape(N, Ho, Wo, cout)                 # stay NHWC


# ---------------------------------------------------------------------------
# Model: forward + deterministic parameter init
# ---------------------------------------------------------------------------
def all_cnn_image_encoder_forward(x_nchw, params):
    feats = jnp.transpose(x_nchw, (0, 2, 3, 1))         # single NCHW->NHWC at entry
    for conv_p, sconv_p in zip(params["convs"], params["sconvs"]):
        feats = conv_bn_relu(feats, conv_p)             # convs[i]
        feats = conv_bn_relu(feats, sconv_p)            # sconvs[i]
    N, H, W, C = feats.shape
    flat = feats.reshape(N, H * W * C)                  # NHWC flatten
    bott = params["bottleneck"]
    scale, shift = _fold_bn(*bott["bn"])
    # torch flattens NCHW features (column order (c, h, w)); fold that
    # permutation plus the BN scale into the bottleneck weight so no final
    # NHWC->NCHW transpose is needed.
    F = bott["w"].shape[0]
    w_hwc = jnp.transpose(bott["w"].reshape(F, C, H, W), (0, 2, 3, 1))
    wmat = w_hwc.reshape(F, H * W * C).T * scale[None, :]
    encoded = fused_matmul_shift_relu(flat, wmat, shift)
    return {"encoded": encoded}


def init_params(key, init_channels, init_features, num_features, bottleneck_features):
    keys = iter(jax.random.split(key, 128))

    def conv_w(cout, cin, k):
        return 0.05 * jax.random.normal(next(keys), (cout, cin, k, k), jnp.float32)

    def bn(c):
        gamma = 1.0 + 0.1 * jax.random.normal(next(keys), (c,), jnp.float32)
        beta = 0.1 * jax.random.normal(next(keys), (c,), jnp.float32)
        rmean = jnp.zeros((c,), jnp.float32)
        rvar = jnp.ones((c,), jnp.float32)
        return (gamma, beta, rmean, rvar)

    convs, sconvs = [], []
    # conv0: Conv2d(init_channels, init_features, 10, stride=1, pad=0)
    convs.append(dict(w=conv_w(init_features, init_channels, 10),
                      bn=bn(init_features), stride=1, pad=0))
    # sconv0: Conv2d(init_features, num_features[0], 4, stride=2, pad=1)
    sconvs.append(dict(w=conv_w(num_features[0], init_features, 4),
                       bn=bn(num_features[0]), stride=2, pad=1))
    for i in range(1, len(num_features)):
        convs.append(dict(w=conv_w(num_features[i - 1], num_features[i - 1], 3),
                          bn=bn(num_features[i - 1]), stride=1, pad=1))
        sconvs.append(dict(w=conv_w(num_features[i], num_features[i - 1], 4),
                           bn=bn(num_features[i]), stride=2, pad=1))
    # bottleneck: Linear(4*num_features[-1], bottleneck_features, bias=False)+BN1d+ReLU
    bott_w = 0.05 * jax.random.normal(
        next(keys), (bottleneck_features, 4 * num_features[-1]), jnp.float32)
    bottleneck = dict(w=bott_w, bn=bn(bottleneck_features))
    return dict(convs=convs, sconvs=sconvs, bottleneck=bottleneck)


# ---------------------------------------------------------------------------
# Pure-JAX reference (eval-mode BN), NCHW like the PyTorch module
# ---------------------------------------------------------------------------
def _reference_forward(x_nchw, params):
    def conv(x, layer):
        scale, shift = _fold_bn(*layer["bn"])
        y = lax.conv_general_dilated(
            x, layer["w"], window_strides=(layer["stride"],) * 2,
            padding=[(layer["pad"], layer["pad"])] * 2,
            dimension_numbers=("NCHW", "OIHW", "NCHW"))
        y = y * scale[None, :, None, None] + shift[None, :, None, None]
        return jnp.maximum(y, 0.0)

    feats = x_nchw
    for conv_p, sconv_p in zip(params["convs"], params["sconvs"]):
        feats = conv(feats, conv_p)
        feats = conv(feats, sconv_p)
    flat = feats.reshape(feats.shape[0], -1)            # torch .view on NCHW
    bott = params["bottleneck"]
    scale, shift = _fold_bn(*bott["bn"])
    y = (flat @ bott["w"].T) * scale[None, :] + shift[None, :]
    return jnp.maximum(y, 0.0)


if __name__ == "__main__":
    # Small config: spatial chosen so the final feature map is 2x2, matching
    # the module's implicit 4*num_features[-1] bottleneck input.
    init_channels, init_features = 4, 8
    num_features = [16, 32]
    bottleneck_features = 32

    key = jax.random.PRNGKey(0)
    kx, kp = jax.random.split(key)
    # 17 -> conv0(k10,s1,p0) -> 8 -> sconv0 -> 4 -> conv1 -> 4 -> sconv1 -> 2
    x = jax.random.normal(kx, (2, init_channels, 17, 17), jnp.float32)
    params = init_params(kp, init_channels, init_features, num_features,
                         bottleneck_features)

    fwd = jax.jit(lambda inp: all_cnn_image_encoder_forward(inp, params))
    out = fwd(x)
    encoded = jax.block_until_ready(out["encoded"])

    assert encoded.shape == (2, bottleneck_features), encoded.shape
    assert bool(jnp.all(encoded >= 0.0))                # ReLU output
    ref = _reference_forward(x, params)
    assert bool(jnp.allclose(encoded, ref, rtol=0.1, atol=0.1)), \
        float(jnp.max(jnp.abs(encoded - ref)))
    print("KERNEL_OK")
</pallas_src>

<mosaic_0001>
module attributes {stable_mosaic.version = 11 : i64} {
  func.func @_matmul_shift_relu_kernel(%arg0: i32, %arg1: i32, %arg2: i32, %arg3: memref<128x512xbf16, #tpu.memory_space<vmem>>, %arg4: memref<512x128xbf16, #tpu.memory_space<vmem>>, %arg5: memref<1x128xf32, #tpu.memory_space<vmem>>, %arg6: memref<128x128xf32, #tpu.memory_space<vmem>>, %arg7: memref<128x128xf32, #tpu.memory_space<vmem>>) attributes {dimension_semantics = [#tpu.dimension_semantics<parallel>, #tpu.dimension_semantics<parallel>, #tpu.dimension_semantics<arbitrary>], iteration_bounds = array<i64: 1, 1, 1>, scalar_prefetch = 0 : i64, scratch_operands = 1 : i64, tpu.core_type = #tpu.core_type<tc>, window_params = [{transform_indices = @transform_0, window_bounds = array<i64: 128, 512>}, {transform_indices = @transform_1, window_bounds = array<i64: 512, 128>}, {transform_indices = @transform_2, window_bounds = array<i64: 1, 128>}, {transform_indices = @transform_3, window_bounds = array<i64: 128, 128>}]} {
    %c0_i32 = arith.constant 0 : i32
    %0 = arith.cmpi eq, %arg2, %c0_i32 : i32
    %1 = arith.extui %0 : i1 to i32
    %c0_i32_0 = arith.constant 0 : i32
    %2 = arith.cmpi ne, %1, %c0_i32_0 : i32
    scf.if %2 {
      %cst_10 = arith.constant 0.000000e+00 : f32
      %12 = vector.broadcast %cst_10 : f32 to vector<128x128xf32>
      %c0_11 = arith.constant 0 : index
      %c0_12 = arith.constant 0 : index
      %13 = vector.load %arg7[%c0_11, %c0_12] : memref<128x128xf32, #tpu.memory_space<vmem>>, vector<128x128xf32>
      tpu.vector_store %arg7[%c0_11, %c0_12], %12 {strides = array<i32>} : memref<128x128xf32, #tpu.memory_space<vmem>>, vector<128x128xf32>,
    } else {
    }
    %c0 = arith.constant 0 : index
    %c0_1 = arith.constant 0 : index
    %3 = vector.load %arg7[%c0, %c0_1] : memref<128x128xf32, #tpu.memory_space<vmem>>, vector<128x128xf32>
    %c0_2 = arith.constant 0 : index
    %c0_3 = arith.constant 0 : index
    %4 = vector.load %arg3[%c0_2, %c0_3] : memref<128x512xbf16, #tpu.memory_space<vmem>>, vector<128x512xbf16>
    %c0_4 = arith.constant 0 : index
    %c0_5 = arith.constant 0 : index
    %5 = vector.load %arg4[%c0_4, %c0_5] : memref<512x128xbf16, #tpu.memory_space<vmem>>, vector<512x128xbf16>
    %cst = arith.constant dense<0.000000e+00> : vector<128x128xf32>
    %6 = tpu.matmul %4, %5, %cst {dimension_numbers = #tpu.dot_dimension_numbers<[1], [0], [0], [1], [0, 0, 1, 1], [], []>} : vector<128x512xbf16>, vector<512x128xbf16>, vector<128x128xf32> -> vector<128x128xf32>
    %7 = arith.addf %3, %6 : vector<128x128xf32>
    %c0_6 = arith.constant 0 : index
    %c0_7 = arith.constant 0 : index
    %8 = vector.load %arg7[%c0_6, %c0_7] : memref<128x128xf32, #tpu.memory_space<vmem>>, vector<128x128xf32>
    tpu.vector_store %arg7[%c0_6, %c0_7], %7 {strides = array<i32>} : memref<128x128xf32, #tpu.memory_space<vmem>>, vector<128x128xf32>,
    %c0_i32_8 = arith.constant 0 : i32
    %9 = arith.cmpi eq, %arg2, %c0_i32_8 : i32
    %10 = arith.extui %9 : i1 to i32
    %c0_i32_9 = arith.constant 0 : i32
    %11 = arith.cmpi ne, %10, %c0_i32_9 : i32
    scf.if %11 {
      %c0_10 = arith.constant 0 : index
      %c0_11 = arith.constant 0 : index
      %12 = vector.load %arg7[%c0_10, %c0_11] : memref<128x128xf32, #tpu.memory_space<vmem>>, vector<128x128xf32>
      %c0_12 = arith.constant 0 : index
      %c0_13 = arith.constant 0 : index
      %13 = vector.load %arg5[%c0_12, %c0_13] : memref<1x128xf32, #tpu.memory_space<vmem>>, vector<1x128xf32>
      %14 = vector.broadcast %13 : vector<1x128xf32> to vector<128x128xf32>
      %15 = arith.addf %12, %14 : vector<128x128xf32>
      %cst_14 = arith.constant 0.000000e+00 : f32
      %16 = vector.broadcast %cst_14 : f32 to vector<128x128xf32>
      %17 = arith.maximumf %15, %16 : vector<128x128xf32>
      %c0_15 = arith.constant 0 : index
      %c0_16 = arith.constant 0 : index
      %18 = vector.load %arg6[%c0_15, %c0_16] : memref<128x128xf32, #tpu.memory_space<vmem>>, vector<128x128xf32>
      tpu.vector_store %arg6[%c0_15, %c0_16], %17 {strides = array<i32>} : memref<128x128xf32, #tpu.memory_space<vmem>>, vector<128x128xf32>,
    } else {
    }
    return
  }
  func.func @transform_0(%arg0: i32, %arg1: i32, %arg2: i32) -> (i32, i32) {
    %c0_i32 = arith.constant 0 : i32
    return %arg0, %arg2 : i32, i32
  }
  func.func @transform_1(%arg0: i32, %arg1: i32, %arg2: i32) -> (i32, i32) {
    %c0_i32 = arith.constant 0 : i32
    return %arg2, %arg1 : i32, i32
  }
  func.func @transform_2(%arg0: i32, %arg1: i32, %arg2: i32) -> (i32, i32) {
    %c0_i32 = arith.constant 0 : i32
    %c0_i32_0 = arith.constant 0 : i32
    return %c0_i32, %arg1 : i32, i32
  }
  func.func @transform_3(%arg0: i32, %arg1: i32, %arg2: i32) -> (i32, i32) {
    %c0_i32 = arith.constant 0 : i32
    return %arg0, %arg1 : i32, i32
  }
}

module attributes {stable_mosaic.version = 11 : i64} {
  func.func @_matmul_shift_relu_kernel(%arg0: i32, %arg1: i32, %arg2: i32, %arg3: memref<32x128xbf16, #tpu.memory_space<vmem>>, %arg4: memref<128x128xbf16, #tpu.memory_space<vmem>>, %arg5: memref<1x128xf32, #tpu.memory_space<vmem>>, %arg6: memref<32x128xf32, #tpu.memory_space<vmem>>, %arg7: memref<32x128xf32, #tpu.memory_space<vmem>>) attributes {dimension_semantics = [#tpu.dimension_semantics<parallel>, #tpu.dimension_semantics<parallel>, #tpu.dimension_semantics<arbitrary>], iteration_bounds = array<i64: 1, 1, 1>, scalar_prefetch = 0 : i64, scratch_operands = 1 : i64, tpu.core_type = #tpu.core_type<tc>, window_params = [{transform_indices = @transform_0, window_bounds = array<i64: 32, 128>}, {transform_indices = @transform_1, window_bounds = array<i64: 128, 128>}, {transform_indices = @transform_2, window_bounds = array<i64: 1, 128>}, {transform_indices = @transform_3, window_bounds = array<i64: 32, 128>}]} {
    %c0_i32 = arith.constant 0 : i32
    %0 = arith.cmpi eq, %arg2, %c0_i32 : i32
    %1 = arith.extui %0 : i1 to i32
    %c0_i32_0 = arith.constant 0 : i32
    %2 = arith.cmpi ne, %1, %c0_i32_0 : i32
    scf.if %2 {
      %cst_10 = arith.constant 0.000000e+00 : f32
      %12 = vector.broadcast %cst_10 : f32 to vector<32x128xf32>
      %c0_11 = arith.constant 0 : index
      %c0_12 = arith.constant 0 : index
      %13 = vector.load %arg7[%c0_11, %c0_12] : memref<32x128xf32, #tpu.memory_space<vmem>>, vector<32x128xf32>
      tpu.vector_store %arg7[%c0_11, %c0_12], %12 {strides = array<i32>} : memref<32x128xf32, #tpu.memory_space<vmem>>, vector<32x128xf32>,
    } else {
    }
    %c0 = arith.constant 0 : index
    %c0_1 = arith.constant 0 : index
    %3 = vector.load %arg7[%c0, %c0_1] : memref<32x128xf32, #tpu.memory_space<vmem>>, vector<32x128xf32>
    %c0_2 = arith.constant 0 : index
    %c0_3 = arith.constant 0 : index
    %4 = vector.load %arg3[%c0_2, %c0_3] : memref<32x128xbf16, #tpu.memory_space<vmem>>, vector<32x128xbf16>
    %c0_4 = arith.constant 0 : index
    %c0_5 = arith.constant 0 : index
    %5 = vector.load %arg4[%c0_4, %c0_5] : memref<128x128xbf16, #tpu.memory_space<vmem>>, vector<128x128xbf16>
    %cst = arith.constant dense<0.000000e+00> : vector<32x128xf32>
    %6 = tpu.matmul %4, %5, %cst {dimension_numbers = #tpu.dot_dimension_numbers<[1], [0], [0], [1], [0, 0, 1, 1], [], []>} : vector<32x128xbf16>, vector<128x128xbf16>, vector<32x128xf32> -> vector<32x128xf32>
    %7 = arith.addf %3, %6 : vector<32x128xf32>
    %c0_6 = arith.constant 0 : index
    %c0_7 = arith.constant 0 : index
    %8 = vector.load %arg7[%c0_6, %c0_7] : memref<32x128xf32, #tpu.memory_space<vmem>>, vector<32x128xf32>
    tpu.vector_store %arg7[%c0_6, %c0_7], %7 {strides = array<i32>} : memref<32x128xf32, #tpu.memory_space<vmem>>, vector<32x128xf32>,
    %c0_i32_8 = arith.constant 0 : i32
    %9 = arith.cmpi eq, %arg2, %c0_i32_8 : i32
    %10 = arith.extui %9 : i1 to i32
    %c0_i32_9 = arith.constant 0 : i32
    %11 = arith.cmpi ne, %10, %c0_i32_9 : i32
    scf.if %11 {
      %c0_10 = arith.constant 0 : index
      %c0_11 = arith.constant 0 : index
      %12 = vector.load %arg7[%c0_10, %c0_11] : memref<32x128xf32, #tpu.memory_space<vmem>>, vector<32x128xf32>
      %c0_12 = arith.constant 0 : index
      %c0_13 = arith.constant 0 : index
      %13 = vector.load %arg5[%c0_12, %c0_13] : memref<1x128xf32, #tpu.memory_space<vmem>>, vector<1x128xf32>
      %14 = vector.broadcast %13 : vector<1x128xf32> to vector<32x128xf32>
      %15 = arith.addf %12, %14 : vector<32x128xf32>
      %cst_14 = arith.constant 0.000000e+00 : f32
      %16 = vector.broadcast %cst_14 : f32 to vector<32x128xf32>
      %17 = arith.maximumf %15, %16 : vector<32x128xf32>
      %c0_15 = arith.constant 0 : index
      %c0_16 = arith.constant 0 : index
      %18 = vector.load %arg6[%c0_15, %c0_16] : memref<32x128xf32, #tpu.memory_space<vmem>>, vector<32x128xf32>
      tpu.vector_store %arg6[%c0_15, %c0_16], %17 {strides = array<i32>} : memref<32x128xf32, #tpu.memory_space<vmem>>, vector<32x128xf32>,
    } else {
    }
    return
  }
  func.func @transform_0(%arg0: i32, %arg1: i32, %arg2: i32) -> (i32, i32) {
    %c0_i32 = arith.constant 0 : i32
    return %arg0, %arg2 : i32, i32
  }
  func.func @transform_1(%arg0: i32, %arg1: i32, %arg2: i32) -> (i32, i32) {
    %c0_i32 = arith.constant 0 : i32
    return %arg2, %arg1 : i32, i32
  }
  func.func @transform_2(%arg0: i32, %arg1: i32, %arg2: i32) -> (i32, i32) {
    %c0_i32 = arith.constant 0 : i32
    %c0_i32_0 = arith.constant 0 : i32
    return %c0_i32, %arg1 : i32, i32
  }
  func.func @transform_3(%arg0: i32, %arg1: i32, %arg2: i32) -> (i32, i32) {
    %c0_i32 = arith.constant 0 : i32
    return %arg0, %arg1 : i32, i32
  }
}

module attributes {stable_mosaic.version = 11 : i64} {
  func.func @_matmul_shift_relu_kernel(%arg0: i32, %arg1: i32, %arg2: i32, %arg3: memref<32x256xbf16, #tpu.memory_space<vmem>>, %arg4: memref<256x128xbf16, #tpu.memory_space<vmem>>, %arg5: memref<1x128xf32, #tpu.memory_space<vmem>>, %arg6: memref<32x128xf32, #tpu.memory_space<vmem>>, %arg7: memref<32x128xf32, #tpu.memory_space<vmem>>) attributes {dimension_semantics = [#tpu.dimension_semantics<parallel>, #tpu.dimension_semantics<parallel>, #tpu.dimension_semantics<arbitrary>], iteration_bounds = array<i64: 1, 1, 1>, scalar_prefetch = 0 : i64, scratch_operands = 1 : i64, tpu.core_type = #tpu.core_type<tc>, window_params = [{transform_indices = @transform_0, window_bounds = array<i64: 32, 256>}, {transform_indices = @transform_1, window_bounds = array<i64: 256, 128>}, {transform_indices = @transform_2, window_bounds = array<i64: 1, 128>}, {transform_indices = @transform_3, window_bounds = array<i64: 32, 128>}]} {
    %c0_i32 = arith.constant 0 : i32
    %0 = arith.cmpi eq, %arg2, %c0_i32 : i32
    %1 = arith.extui %0 : i1 to i32
    %c0_i32_0 = arith.constant 0 : i32
    %2 = arith.cmpi ne, %1, %c0_i32_0 : i32
    scf.if %2 {
      %cst_10 = arith.constant 0.000000e+00 : f32
      %12 = vector.broadcast %cst_10 : f32 to vector<32x128xf32>
      %c0_11 = arith.constant 0 : index
      %c0_12 = arith.constant 0 : index
      %13 = vector.load %arg7[%c0_11, %c0_12] : memref<32x128xf32, #tpu.memory_space<vmem>>, vector<32x128xf32>
      tpu.vector_store %arg7[%c0_11, %c0_12], %12 {strides = array<i32>} : memref<32x128xf32, #tpu.memory_space<vmem>>, vector<32x128xf32>,
    } else {
    }
    %c0 = arith.constant 0 : index
    %c0_1 = arith.constant 0 : index
    %3 = vector.load %arg7[%c0, %c0_1] : memref<32x128xf32, #tpu.memory_space<vmem>>, vector<32x128xf32>
    %c0_2 = arith.constant 0 : index
    %c0_3 = arith.constant 0 : index
    %4 = vector.load %arg3[%c0_2, %c0_3] : memref<32x256xbf16, #tpu.memory_space<vmem>>, vector<32x256xbf16>
    %c0_4 = arith.constant 0 : index
    %c0_5 = arith.constant 0 : index
    %5 = vector.load %arg4[%c0_4, %c0_5] : memref<256x128xbf16, #tpu.memory_space<vmem>>, vector<256x128xbf16>
    %cst = arith.constant dense<0.000000e+00> : vector<32x128xf32>
    %6 = tpu.matmul %4, %5, %cst {dimension_numbers = #tpu.dot_dimension_numbers<[1], [0], [0], [1], [0, 0, 1, 1], [], []>} : vector<32x256xbf16>, vector<256x128xbf16>, vector<32x128xf32> -> vector<32x128xf32>
    %7 = arith.addf %3, %6 : vector<32x128xf32>
    %c0_6 = arith.constant 0 : index
    %c0_7 = arith.constant 0 : index
    %8 = vector.load %arg7[%c0_6, %c0_7] : memref<32x128xf32, #tpu.memory_space<vmem>>, vector<32x128xf32>
    tpu.vector_store %arg7[%c0_6, %c0_7], %7 {strides = array<i32>} : memref<32x128xf32, #tpu.memory_space<vmem>>, vector<32x128xf32>,
    %c0_i32_8 = arith.constant 0 : i32
    %9 = arith.cmpi eq, %arg2, %c0_i32_8 : i32
    %10 = arith.extui %9 : i1 to i32
    %c0_i32_9 = arith.constant 0 : i32
    %11 = arith.cmpi ne, %10, %c0_i32_9 : i32
    scf.if %11 {
      %c0_10 = arith.constant 0 : index
      %c0_11 = arith.constant 0 : index
      %12 = vector.load %arg7[%c0_10, %c0_11] : memref<32x128xf32, #tpu.memory_space<vmem>>, vector<32x128xf32>
      %c0_12 = arith.constant 0 : index
      %c0_13 = arith.constant 0 : index
      %13 = vector.load %arg5[%c0_12, %c0_13] : memref<1x128xf32, #tpu.memory_space<vmem>>, vector<1x128xf32>
      %14 = vector.broadcast %13 : vector<1x128xf32> to vector<32x128xf32>
      %15 = arith.addf %12, %14 : vector<32x128xf32>
      %cst_14 = arith.constant 0.000000e+00 : f32
      %16 = vector.broadcast %cst_14 : f32 to vector<32x128xf32>
      %17 = arith.maximumf %15, %16 : vector<32x128xf32>
      %c0_15 = arith.constant 0 : index
      %c0_16 = arith.constant 0 : index
      %18 = vector.load %arg6[%c0_15, %c0_16] : memref<32x128xf32, #tpu.memory_space<vmem>>, vector<32x128xf32>
      tpu.vector_store %arg6[%c0_15, %c0_16], %17 {strides = array<i32>} : memref<32x128xf32, #tpu.memory_space<vmem>>, vector<32x128xf32>,
    } else {
    }
    return
  }
  func.func @transform_0(%arg0: i32, %arg1: i32, %arg2: i32) -> (i32, i32) {
    %c0_i32 = arith.constant 0 : i32
    return %arg0, %arg2 : i32, i32
  }
  func.func @transform_1(%arg0: i32, %arg1: i32, %arg2: i32) -> (i32, i32) {
    %c0_i32 = arith.constant 0 : i32
    return %arg2, %arg1 : i32, i32
  }
  func.func @transform_2(%arg0: i32, %arg1: i32, %arg2: i32) -> (i32, i32) {
    %c0_i32 = arith.constant 0 : i32
    %c0_i32_0 = arith.constant 0 : i32
    return %c0_i32, %arg1 : i32, i32
  }
  func.func @transform_3(%arg0: i32, %arg1: i32, %arg2: i32) -> (i32, i32) {
    %c0_i32 = arith.constant 0 : i32
    return %arg0, %arg1 : i32, i32
  }
}

module attributes {stable_mosaic.version = 11 : i64} {
  func.func @_matmul_shift_relu_kernel(%arg0: i32, %arg1: i32, %arg2: i32, %arg3: memref<16x256xbf16, #tpu.memory_space<vmem>>, %arg4: memref<256x128xbf16, #tpu.memory_space<vmem>>, %arg5: memref<1x128xf32, #tpu.memory_space<vmem>>, %arg6: memref<16x128xf32, #tpu.memory_space<vmem>>, %arg7: memref<16x128xf32, #tpu.memory_space<vmem>>) attributes {dimension_semantics = [#tpu.dimension_semantics<parallel>, #tpu.dimension_semantics<parallel>, #tpu.dimension_semantics<arbitrary>], iteration_bounds = array<i64: 1, 1, 1>, scalar_prefetch = 0 : i64, scratch_operands = 1 : i64, tpu.core_type = #tpu.core_type<tc>, window_params = [{transform_indices = @transform_0, window_bounds = array<i64: 16, 256>}, {transform_indices = @transform_1, window_bounds = array<i64: 256, 128>}, {transform_indices = @transform_2, window_bounds = array<i64: 1, 128>}, {transform_indices = @transform_3, window_bounds = array<i64: 16, 128>}]} {
    %c0_i32 = arith.constant 0 : i32
    %0 = arith.cmpi eq, %arg2, %c0_i32 : i32
    %1 = arith.extui %0 : i1 to i32
    %c0_i32_0 = arith.constant 0 : i32
    %2 = arith.cmpi ne, %1, %c0_i32_0 : i32
    scf.if %2 {
      %cst_10 = arith.constant 0.000000e+00 : f32
      %12 = vector.broadcast %cst_10 : f32 to vector<16x128xf32>
      %c0_11 = arith.constant 0 : index
      %c0_12 = arith.constant 0 : index
      %13 = vector.load %arg7[%c0_11, %c0_12] : memref<16x128xf32, #tpu.memory_space<vmem>>, vector<16x128xf32>
      tpu.vector_store %arg7[%c0_11, %c0_12], %12 {strides = array<i32>} : memref<16x128xf32, #tpu.memory_space<vmem>>, vector<16x128xf32>,
    } else {
    }
    %c0 = arith.constant 0 : index
    %c0_1 = arith.constant 0 : index
    %3 = vector.load %arg7[%c0, %c0_1] : memref<16x128xf32, #tpu.memory_space<vmem>>, vector<16x128xf32>
    %c0_2 = arith.constant 0 : index
    %c0_3 = arith.constant 0 : index
    %4 = vector.load %arg3[%c0_2, %c0_3] : memref<16x256xbf16, #tpu.memory_space<vmem>>, vector<16x256xbf16>
    %c0_4 = arith.constant 0 : index
    %c0_5 = arith.constant 0 : index
    %5 = vector.load %arg4[%c0_4, %c0_5] : memref<256x128xbf16, #tpu.memory_space<vmem>>, vector<256x128xbf16>
    %cst = arith.constant dense<0.000000e+00> : vector<16x128xf32>
    %6 = tpu.matmul %4, %5, %cst {dimension_numbers = #tpu.dot_dimension_numbers<[1], [0], [0], [1], [0, 0, 1, 1], [], []>} : vector<16x256xbf16>, vector<256x128xbf16>, vector<16x128xf32> -> vector<16x128xf32>
    %7 = arith.addf %3, %6 : vector<16x128xf32>
    %c0_6 = arith.constant 0 : index
    %c0_7 = arith.constant 0 : index
    %8 = vector.load %arg7[%c0_6, %c0_7] : memref<16x128xf32, #tpu.memory_space<vmem>>, vector<16x128xf32>
    tpu.vector_store %arg7[%c0_6, %c0_7], %7 {strides = array<i32>} : memref<16x128xf32, #tpu.memory_space<vmem>>, vector<16x128xf32>,
    %c0_i32_8 = arith.constant 0 : i32
    %9 = arith.cmpi eq, %arg2, %c0_i32_8 : i32
    %10 = arith.extui %9 : i1 to i32
    %c0_i32_9 = arith.constant 0 : i32
    %11 = arith.cmpi ne, %10, %c0_i32_9 : i32
    scf.if %11 {
      %c0_10 = arith.constant 0 : index
      %c0_11 = arith.constant 0 : index
      %12 = vector.load %arg7[%c0_10, %c0_11] : memref<16x128xf32, #tpu.memory_space<vmem>>, vector<16x128xf32>
      %c0_12 = arith.constant 0 : index
      %c0_13 = arith.constant 0 : index
      %13 = vector.load %arg5[%c0_12, %c0_13] : memref<1x128xf32, #tpu.memory_space<vmem>>, vector<1x128xf32>
      %14 = vector.broadcast %13 : vector<1x128xf32> to vector<16x128xf32>
      %15 = arith.addf %12, %14 : vector<16x128xf32>
      %cst_14 = arith.constant 0.000000e+00 : f32
      %16 = vector.broadcast %cst_14 : f32 to vector<16x128xf32>
      %17 = arith.maximumf %15, %16 : vector<16x128xf32>
      %c0_15 = arith.constant 0 : index
      %c0_16 = arith.constant 0 : index
      %18 = vector.load %arg6[%c0_15, %c0_16] : memref<16x128xf32, #tpu.memory_space<vmem>>, vector<16x128xf32>
      tpu.vector_store %arg6[%c0_15, %c0_16], %17 {strides = array<i32>} : memref<16x128xf32, #tpu.memory_space<vmem>>, vector<16x128xf32>,
    } else {
    }
    return
  }
  func.func @transform_0(%arg0: i32, %arg1: i32, %arg2: i32) -> (i32, i32) {
    %c0_i32 = arith.constant 0 : i32
    return %arg0, %arg2 : i32, i32
  }
  func.func @transform_1(%arg0: i32, %arg1: i32, %arg2: i32) -> (i32, i32) {
    %c0_i32 = arith.constant 0 : i32
    return %arg2, %arg1 : i32, i32
  }
  func.func @transform_2(%arg0: i32, %arg1: i32, %arg2: i32) -> (i32, i32) {
    %c0_i32 = arith.constant 0 : i32
    %c0_i32_0 = arith.constant 0 : i32
    return %c0_i32, %arg1 : i32, i32
  }
  func.func @transform_3(%arg0: i32, %arg1: i32, %arg2: i32) -> (i32, i32) {
    %c0_i32 = arith.constant 0 : i32
    return %arg0, %arg1 : i32, i32
  }
}

module attributes {stable_mosaic.version = 11 : i64} {
  func.func @_matmul_shift_relu_kernel(%arg0: i32, %arg1: i32, %arg2: i32, %arg3: memref<16x128xbf16, #tpu.memory_space<vmem>>, %arg4: memref<128x128xbf16, #tpu.memory_space<vmem>>, %arg5: memref<1x128xf32, #tpu.memory_space<vmem>>, %arg6: memref<16x128xf32, #tpu.memory_space<vmem>>, %arg7: memref<16x128xf32, #tpu.memory_space<vmem>>) attributes {dimension_semantics = [#tpu.dimension_semantics<parallel>, #tpu.dimension_semantics<parallel>, #tpu.dimension_semantics<arbitrary>], iteration_bounds = array<i64: 1, 1, 1>, scalar_prefetch = 0 : i64, scratch_operands = 1 : i64, tpu.core_type = #tpu.core_type<tc>, window_params = [{transform_indices = @transform_0, window_bounds = array<i64: 16, 128>}, {transform_indices = @transform_1, window_bounds = array<i64: 128, 128>}, {transform_indices = @transform_2, window_bounds = array<i64: 1, 128>}, {transform_indices = @transform_3, window_bounds = array<i64: 16, 128>}]} {
    %c0_i32 = arith.constant 0 : i32
    %0 = arith.cmpi eq, %arg2, %c0_i32 : i32
    %1 = arith.extui %0 : i1 to i32
    %c0_i32_0 = arith.constant 0 : i32
    %2 = arith.cmpi ne, %1, %c0_i32_0 : i32
    scf.if %2 {
      %cst_10 = arith.constant 0.000000e+00 : f32
      %12 = vector.broadcast %cst_10 : f32 to vector<16x128xf32>
      %c0_11 = arith.constant 0 : index
      %c0_12 = arith.constant 0 : index
      %13 = vector.load %arg7[%c0_11, %c0_12] : memref<16x128xf32, #tpu.memory_space<vmem>>, vector<16x128xf32>
      tpu.vector_store %arg7[%c0_11, %c0_12], %12 {strides = array<i32>} : memref<16x128xf32, #tpu.memory_space<vmem>>, vector<16x128xf32>,
    } else {
    }
    %c0 = arith.constant 0 : index
    %c0_1 = arith.constant 0 : index
    %3 = vector.load %arg7[%c0, %c0_1] : memref<16x128xf32, #tpu.memory_space<vmem>>, vector<16x128xf32>
    %c0_2 = arith.constant 0 : index
    %c0_3 = arith.constant 0 : index
    %4 = vector.load %arg3[%c0_2, %c0_3] : memref<16x128xbf16, #tpu.memory_space<vmem>>, vector<16x128xbf16>
    %c0_4 = arith.constant 0 : index
    %c0_5 = arith.constant 0 : index
    %5 = vector.load %arg4[%c0_4, %c0_5] : memref<128x128xbf16, #tpu.memory_space<vmem>>, vector<128x128xbf16>
    %cst = arith.constant dense<0.000000e+00> : vector<16x128xf32>
    %6 = tpu.matmul %4, %5, %cst {dimension_numbers = #tpu.dot_dimension_numbers<[1], [0], [0], [1], [0, 0, 1, 1], [], []>} : vector<16x128xbf16>, vector<128x128xbf16>, vector<16x128xf32> -> vector<16x128xf32>
    %7 = arith.addf %3, %6 : vector<16x128xf32>
    %c0_6 = arith.constant 0 : index
    %c0_7 = arith.constant 0 : index
    %8 = vector.load %arg7[%c0_6, %c0_7] : memref<16x128xf32, #tpu.memory_space<vmem>>, vector<16x128xf32>
    tpu.vector_store %arg7[%c0_6, %c0_7], %7 {strides = array<i32>} : memref<16x128xf32, #tpu.memory_space<vmem>>, vector<16x128xf32>,
    %c0_i32_8 = arith.constant 0 : i32
    %9 = arith.cmpi eq, %arg2, %c0_i32_8 : i32
    %10 = arith.extui %9 : i1 to i32
    %c0_i32_9 = arith.constant 0 : i32
    %11 = arith.cmpi ne, %10, %c0_i32_9 : i32
    scf.if %11 {
      %c0_10 = arith.constant 0 : index
      %c0_11 = arith.constant 0 : index
      %12 = vector.load %arg7[%c0_10, %c0_11] : memref<16x128xf32, #tpu.memory_space<vmem>>, vector<16x128xf32>
      %c0_12 = arith.constant 0 : index
      %c0_13 = arith.constant 0 : index
      %13 = vector.load %arg5[%c0_12, %c0_13] : memref<1x128xf32, #tpu.memory_space<vmem>>, vector<1x128xf32>
      %14 = vector.broadcast %13 : vector<1x128xf32> to vector<16x128xf32>
      %15 = arith.addf %12, %14 : vector<16x128xf32>
      %cst_14 = arith.constant 0.000000e+00 : f32
      %16 = vector.broadcast %cst_14 : f32 to vector<16x128xf32>
      %17 = arith.maximumf %15, %16 : vector<16x128xf32>
      %c0_15 = arith.constant 0 : index
      %c0_16 = arith.constant 0 : index
      %18 = vector.load %arg6[%c0_15, %c0_16] : memref<16x128xf32, #tpu.memory_space<vmem>>, vector<16x128xf32>
      tpu.vector_store %arg6[%c0_15, %c0_16], %17 {strides = array<i32>} : memref<16x128xf32, #tpu.memory_space<vmem>>, vector<16x128xf32>,
    } else {
    }
    return
  }
  func.func @transform_0(%arg0: i32, %arg1: i32, %arg2: i32) -> (i32, i32) {
    %c0_i32 = arith.constant 0 : i32
    return %arg0, %arg2 : i32, i32
  }
  func.func @transform_1(%arg0: i32, %arg1: i32, %arg2: i32) -> (i32, i32) {
    %c0_i32 = arith.constant 0 : i32
    return %arg2, %arg1 : i32, i32
  }
  func.func @transform_2(%arg0: i32, %arg1: i32, %arg2: i32) -> (i32, i32) {
    %c0_i32 = arith.constant 0 : i32
    %c0_i32_0 = arith.constant 0 : i32
    return %c0_i32, %arg1 : i32, i32
  }
  func.func @transform_3(%arg0: i32, %arg1: i32, %arg2: i32) -> (i32, i32) {
    %c0_i32 = arith.constant 0 : i32
    return %arg0, %arg1 : i32, i32
  }
}

</mosaic_0001>

<bundles_post_ra>
// kernel: _lambda_.5
= control target key start
LH: loop header
LB: loop body
LE: loop exit
PB: predicated region body
PF: predicated region fallthrough
CT: control target
= control target key end

     0   :  { %s1357_s1 = inlined_call_operand.vmem [shape: bf16[512,128], index: 1, kind: input, shape index: {}]   ;;  %s1358_s0 = inlined_call_operand.vmem [shape: bf16[128,512], index: 0, kind: input, shape index: {}]   ;;  %s1359_s2 = inlined_call_operand.vmem [shape: f32[1,128], index: 2, kind: input, shape index: {}]   ;;  %s1360_s3 = inlined_call_operand.vmem [shape: f32[128,128], index: 3, kind: output, shape index: {}]  }
   0x1   :  { %v996_v0 = vld [vmem:[%s1357_s1 + $0x78] sm:$0xff]   ;;  %v1000_v4 = vld [vmem:[%s1357_s1 + $0x70] sm:$0xff]   ;;  %v1004_v8 = vld [vmem:[%s1357_s1 + $0x68] sm:$0xff]  }
   0x2   :  { %v997_v1 = vld [vmem:[%s1357_s1 + $0xf8] sm:$0xff]   ;;  %868 = vmatprep.subr.bf16.mxu0 %v996_v0  ;;  %v1001_v5 = vld [vmem:[%s1357_s1 + $0xf0] sm:$0xff]   ;;  %v1005_v9 = vld [vmem:[%s1357_s1 + $0xe8] sm:$0xff]  }
   0x3   :  { %v998_v2 = vld [vmem:[%s1357_s1 + $0x38] sm:$0xff]   ;;  %932 = vmatprep.subr.bf16.mxu1 %v997_v1  ;;  %v1002_v6 = vld [vmem:[%s1357_s1 + $0x30] sm:$0xff]   ;;  %v1006_v10 = vld [vmem:[%s1357_s1 + $0x28] sm:$0xff]  }
   0x4   :  { %v999_v3 = vld [vmem:[%s1357_s1 + $0xb8] sm:$0xff]   ;;  %869 = vmatpush3.bf16.msra.mxu0 %v998_v2  ;;  %v1003_v7 = vld [vmem:[%s1357_s1 + $0xb0] sm:$0xff]   ;;  %v1007_v11 = vld [vmem:[%s1357_s1 + $0xa8] sm:$0xff]  }
   0x5   :  { %933 = vmatpush3.bf16.msra.mxu1 %v999_v3  ;;  %870 = vmatprep.subr.bf16.mxu0 %v1000_v4  ;;  %v1008_v12 = vld [vmem:[%s1357_s1 + $0x60] sm:$0xff]   ;;  %v1012_v16 = vld [vmem:[%s1357_s1 + $0x58] sm:$0xff]   ;;  %v1016_v20 = vld [vmem:[%s1357_s1 + $0x50] sm:$0xff]  }
   0x6   :  { %934 = vmatprep.subr.bf16.mxu1 %v1001_v5  ;;  %v1009_v13 = vld [vmem:[%s1357_s1 + $0xe0] sm:$0xff]   ;;  %v1013_v17 = vld [vmem:[%s1357_s1 + $0xd8] sm:$0xff]   ;;  %v1017_v21 = vld [vmem:[%s1357_s1 + $0xd0] sm:$0xff]  }
   0x7   :  { %v1010_v14 = vld [vmem:[%s1357_s1 + $0x20] sm:$0xff]   ;;  %v1014_v18 = vld [vmem:[%s1357_s1 + $0x18] sm:$0xff]   ;;  %v1018_v22 = vld [vmem:[%s1357_s1 + $0x10] sm:$0xff]  }
   0x8   :  { %871 = vmatpush3.bf16.msra.mxu0 %v1002_v6  ;;  %v1011_v15 = vld [vmem:[%s1357_s1 + $0xa0] sm:$0xff]   ;;  %v1015_v19 = vld [vmem:[%s1357_s1 + $0x98] sm:$0xff]   ;;  %v1019_v23 = vld [vmem:[%s1357_s1 + $0x90] sm:$0xff]  }
   0x9   :  { %935 = vmatpush3.bf16.msra.mxu1 %v1003_v7  ;;  %872 = vmatprep.subr.bf16.mxu0 %v1004_v8  ;;  %v1020_v24 = vld [vmem:[%s1357_s1 + $0x48] sm:$0xff]   ;;  %v1024_v28 = vld [vmem:[%s1357_s1 + $0x40] sm:$0xff]  }
   0xa   :  { %936 = vmatprep.subr.bf16.mxu1 %v1005_v9  ;;  %v1021_v25 = vld [vmem:[%s1357_s1 + $0xc8] sm:$0xff]   ;;  %v1025_v29 = vld [vmem:[%s1357_s1 + $0xc0] sm:$0xff]  }
   0xb   :  { %v1022_v26 = vld [vmem:[%s1357_s1 + $0x8] sm:$0xff]   ;;  %v1026_v30 = vld [vmem:[%s1357_s1] sm:$0xff]  }
   0xc   :  { %873 = vmatpush3.bf16.msra.mxu0 %v1006_v10  ;;  %v1023_v27 = vld [vmem:[%s1357_s1 + $0x88] sm:$0xff]   ;;  %v1027_v31 = vld [vmem:[%s1357_s1 + $0x80] sm:$0xff]  }
   0xd   :  { %937 = vmatpush3.bf16.msra.mxu1 %v1007_v11  ;;  %874 = vmatprep.subr.bf16.mxu0 %v1008_v12  ;;  %v1028_v32 = vld [vmem:[%s1358_s0] ss:$16 sps:$4 sm:$0xff]   ;;  %v1030_v33 = vld [vmem:[%s1358_s0 + $0x4] ss:$16 sps:$4 sm:$0xff]   ;;  %v1031_v34 = vld [vmem:[%s1358_s0 + $0x8] ss:$16 sps:$4 sm:$0xff]  }
   0xe   :  { %938 = vmatprep.subr.bf16.mxu1 %v1009_v13  ;;  %v1033_v35 = vld [vmem:[%s1358_s0 + $0xc] ss:$16 sps:$4 sm:$0xff]   ;;  %531 = vmatprep.mubr.bf16.mxu0 %v1030_v33  ;;  %v1034_v36 = vld [vmem:[%s1358_s0 + $0x24] ss:$16 sps:$4 sm:$0xff]   ;;  %v1038_v38 = vld [vmem:[%s1358_s0 + $0x20] ss:$16 sps:$4 sm:$0xff]  }
   0xf   :  { %628 = vmatprep.mubr.bf16.mxu1 %v1033_v35  ;;  %v1036_v37 = vld [vmem:[%s1358_s0 + $0x2c] ss:$16 sps:$4 sm:$0xff]   ;;  %v1039_v39 = vld [vmem:[%s1358_s0 + $0x28] ss:$16 sps:$4 sm:$0xff]   ;;  %v1040_v40 = vld [vmem:[%s1358_s0 + $0x44] ss:$16 sps:$4 sm:$0xff]  }
  0x10   :  { %875 = vmatpush3.bf16.msra.mxu0 %v1010_v14  ;;  %v1042_v41 = vld [vmem:[%s1358_s0 + $0x4c] ss:$16 sps:$4 sm:$0xff]   ;;  %v1044_v42 = vld [vmem:[%s1358_s0 + $0x40] ss:$16 sps:$4 sm:$0xff]   ;;  %v1045_v43 = vld [vmem:[%s1358_s0 + $0x48] ss:$16 sps:$4 sm:$0xff]  }
  0x11   :  { %939 = vmatpush3.bf16.msra.mxu1 %v1011_v15  ;;  %876 = vmatprep.subr.bf16.mxu0 %v1012_v16  ;;  %v1046_v44 = vld [vmem:[%s1358_s0 + $0x64] ss:$16 sps:$4 sm:$0xff]   ;;  %v1048_v45 = vld [vmem:[%s1358_s0 + $0x6c] ss:$16 sps:$4 sm:$0xff]   ;;  %v1050_v46 = vld [vmem:[%s1358_s0 + $0x60] ss:$16 sps:$4 sm:$0xff]  }
  0x12   :  { %940 = vmatprep.subr.bf16.mxu1 %v1013_v17  ;;  %v1051_v47 = vld [vmem:[%s1358_s0 + $0x68] ss:$16 sps:$4 sm:$0xff]   ;;  %v1052_v48 = vld [vmem:[%s1358_s0 + $0x84] ss:$16 sps:$4 sm:$0xff]   ;;  %v1054_v49 = vld [vmem:[%s1358_s0 + $0x8c] ss:$16 sps:$4 sm:$0xff]  }
  0x13   :  { %v1056_v50 = vld [vmem:[%s1358_s0 + $0x80] ss:$16 sps:$4 sm:$0xff]   ;;  %v1057_v51 = vld [vmem:[%s1358_s0 + $0x88] ss:$16 sps:$4 sm:$0xff]   ;;  %v1058_v52 = vld [vmem:[%s1358_s0 + $0xa4] ss:$16 sps:$4 sm:$0xff]  }
  0x14   :  { %877 = vmatpush3.bf16.msra.mxu0 %v1014_v18  ;;  %v1060_v53 = vld [vmem:[%s1358_s0 + $0xac] ss:$16 sps:$4 sm:$0xff]   ;;  %v1062_v54 = vld [vmem:[%s1358_s0 + $0xa0] ss:$16 sps:$4 sm:$0xff]   ;;  %v1063_v55 = vld [vmem:[%s1358_s0 + $0xa8] ss:$16 sps:$4 sm:$0xff]  }
  0x15   :  { %941 = vmatpush3.bf16.msra.mxu1 %v1015_v19  ;;  %878 = vmatprep.subr.bf16.mxu0 %v1016_v20  ;;  %v1064_v56 = vld [vmem:[%s1358_s0 + $0xc4] ss:$16 sps:$4 sm:$0xff]   ;;  %v1066_v57 = vld [vmem:[%s1358_s0 + $0xcc] ss:$16 sps:$4 sm:$0xff]   ;;  %v1068_v58 = vld [vmem:[%s1358_s0 + $0xc0] ss:$16 sps:$4 sm:$0xff]  }
  0x16   :  { %942 = vmatprep.subr.bf16.mxu1 %v1017_v21  ;;  %v1069_v59 = vld [vmem:[%s1358_s0 + $0xc8] ss:$16 sps:$4 sm:$0xff]   ;;  %v1070_v60 = vld [vmem:[%s1358_s0 + $0xe4] ss:$16 sps:$4 sm:$0xff]   ;;  %v1072_v61 = vld [vmem:[%s1358_s0 + $0xec] ss:$16 sps:$4 sm:$0xff]  }
  0x17   :  { %v1074_v62 = vld [vmem:[%s1358_s0 + $0xe0] ss:$16 sps:$4 sm:$0xff]   ;;  %v1075_v63 = vld [vmem:[%s1358_s0 + $0xe8] ss:$16 sps:$4 sm:$0xff]  }
  0x18   :  { %879 = vmatpush3.bf16.msra.mxu0 %v1018_v22  ;;  %v1291_v7 = vld [vmem:[%s1359_s2] ss:$0 sm:$0xff] }
  0x19   :  { %943 = vmatpush3.bf16.msra.mxu1 %v1019_v23  ;;  %880 = vmatprep.subr.bf16.mxu0 %v1020_v24 }
  0x1a   :  { %944 = vmatprep.subr.bf16.mxu1 %v1021_v25 }
  0x1c   :  { %881 = vmatpush3.bf16.msra.mxu0 %v1022_v26 }
  0x1d   :  { %945 = vmatpush3.bf16.msra.mxu1 %v1023_v27  ;;  %882 = vmatprep.subr.bf16.mxu0 %v1024_v28 }
  0x1e   :  { %946 = vmatprep.subr.bf16.mxu1 %v1025_v29 }
  0x20   :  { %883 = vmatpush3.bf16.msra.mxu0 %v1026_v30 }
  0x21   :  { %947 = vmatpush3.bf16.msra.mxu1 %v1027_v31 }
  0x23   :  { %532 = vmatmul.mubr.bf16.vlgmr.msra.gmra.mxu0 %v1028_v32 }
  0x24   :  { %629 = vmatmul.mubr.bf16.vlgmr.msra.gmra.mxu1 %v1031_v34  ;;  %539 = vmatprep.mubr.bf16.mxu0 %v1034_v36 }
  0x25   :  { %636 = vmatprep.mubr.bf16.mxu1 %v1036_v37 }
  0x2b   :  { %540 = vmatmul.mubr.bf16.gmra.mxu0 %v1038_v38 }
  0x2c   :  { %637 = vmatmul.mubr.bf16.gmra.mxu1 %v1039_v39  ;;  %547 = vmatprep.mubr.bf16.mxu0 %v1040_v40 }
  0x2d   :  { %644 = vmatprep.mubr.bf16.mxu1 %v1042_v41 }
  0x33   :  { %548 = vmatmul.mubr.bf16.gmra.mxu0 %v1044_v42 }
  0x34   :  { %645 = vmatmul.mubr.bf16.gmra.mxu1 %v1045_v43  ;;  %555 = vmatprep.mubr.bf16.mxu0 %v1046_v44 }
  0x35   :  { %652 = vmatprep.mubr.bf16.mxu1 %v1048_v45 }
  0x3b   :  { %556 = vmatmul.mubr.bf16.gmra.mxu0 %v1050_v46 }
  0x3c   :  { %653 = vmatmul.mubr.bf16.gmra.mxu1 %v1051_v47  ;;  %563 = vmatprep.mubr.bf16.mxu0 %v1052_v48 }
  0x3d   :  { %660 = vmatprep.mubr.bf16.mxu1 %v1054_v49 }
  0x43   :  { %564 = vmatmul.mubr.bf16.gmra.mxu0 %v1056_v50 }
  0x44   :  { %661 = vmatmul.mubr.bf16.gmra.mxu1 %v1057_v51  ;;  %571 = vmatprep.mubr.bf16.mxu0 %v1058_v52 }
  0x45   :  { %668 = vmatprep.mubr.bf16.mxu1 %v1060_v53 }
  0x4b   :  { %572 = vmatmul.mubr.bf16.gmra.mxu0 %v1062_v54 }
  0x4c   :  { %669 = vmatmul.mubr.bf16.gmra.mxu1 %v1063_v55  ;;  %579 = vmatprep.mubr.bf16.mxu0 %v1064_v56 }
  0x4d   :  { %676 = vmatprep.mubr.bf16.mxu1 %v1066_v57 }
  0x53   :  { %580 = vmatmul.mubr.bf16.gmra.mxu0 %v1068_v58 }
  0x54   :  { %677 = vmatmul.mubr.bf16.gmra.mxu1 %v1069_v59  ;;  %587 = vmatprep.mubr.bf16.mxu0 %v1070_v60 }
  0x55   :  { %684 = vmatprep.mubr.bf16.mxu1 %v1072_v61 }
  0x5b   :  { %588 = vmatmul.mubr.bf16.gmra.mxu0 %v1074_v62 }
  0x5c   :  { %685 = vmatmul.mubr.bf16.gmra.mxu1 %v1075_v63 }
  0xe3   :  { %v884_v0 = vpop.f32.mrf.mxu0 }
  0xe4   :  { %v948_v1 = vpop.f32.mrf.mxu1 }
  0xe5   :  { %v885_v2 = vpop.f32.mrf.mxu0 }
  0xe6   :  { %v886_v3 = vadd.f32 %v885_v2, %v884_v0  ;;  %v949_v4 = vpop.f32.mrf.mxu1 }
  0xe7   :  { %v950_v5 = vadd.f32 %v949_v4, %v948_v1  ;;  %v887_v6 = vpop.f32.mrf.mxu0 }
  0xe8   :  { %v951_v8 = vpop.f32.mrf.mxu1 }
  0xe9   :  { %v631_v9 = vadd.f32 %v950_v5, %v886_v3  ;;  %v888_v10 = vpop.f32.mrf.mxu0 }
  0xea   :  { %v889_v11 = vadd.f32 %v888_v10, %v887_v6  ;;  %v952_v12 = vpop.f32.mrf.mxu1 }
  0xeb   :  { %v751_v13 = vadd.f32 %v1291_v7, %v631_v9  ;;  %v953_v14 = vadd.f32 %v952_v12, %v951_v8  ;;  %v890_v15 = vpop.f32.mrf.mxu0 }
  0xec   :  { %v954_v16 = vpop.f32.mrf.mxu1 }
  0xed   :  { %v767_v17 = vmax.f32 %v751_v13, 0.0  ;;  %v634_v18 = vadd.f32 %v953_v14, %v889_v11  ;;  %v891_v19 = vpop.f32.mrf.mxu0 }
  0xee   :  { %v892_v20 = vadd.f32 %v891_v19, %v890_v15  ;;  %v955_v21 = vpop.f32.mrf.mxu1 }
  0xef   :  { %783 = vst [vmem:[%s1360_s3] sm:$0xff] %v767_v17  ;;  %v752_v22 = vadd.f32 %v1291_v7, %v634_v18  ;;  %v956_v23 = vadd.f32 %v955_v21, %v954_v16  ;;  %v893_v24 = vpop.f32.mrf.mxu0 }
  0xf0   :  { %v957_v25 = vpop.f32.mrf.mxu1 }
  0xf1   :  { %v768_v26 = vmax.f32 %v752_v22, 0.0  ;;  %v639_v27 = vadd.f32 %v956_v23, %v892_v20  ;;  %v894_v28 = vpop.f32.mrf.mxu0 }
  0xf2   :  { %v895_v29 = vadd.f32 %v894_v28, %v893_v24  ;;  %v958_v30 = vpop.f32.mrf.mxu1 }
  0xf3   :  { %784 = vst [vmem:[%s1360_s3 + $0x8] sm:$0xff] %v768_v26  ;;  %v753_v31 = vadd.f32 %v1291_v7, %v639_v27  ;;  %v959_v32 = vadd.f32 %v958_v30, %v957_v25  ;;  %v896_v33 = vpop.f32.mrf.mxu0 }
  0xf4   :  { %v960_v34 = vpop.f32.mrf.mxu1 }
  0xf5   :  { %v769_v35 = vmax.f32 %v753_v31, 0.0  ;;  %v642_v36 = vadd.f32 %v959_v32, %v895_v29  ;;  %v897_v37 = vpop.f32.mrf.mxu0 }
  0xf6   :  { %v898_v38 = vadd.f32 %v897_v37, %v896_v33  ;;  %v961_v39 = vpop.f32.mrf.mxu1 }
  0xf7   :  { %785 = vst [vmem:[%s1360_s3 + $0x10] sm:$0xff] %v769_v35  ;;  %v754_v40 = vadd.f32 %v1291_v7, %v642_v36  ;;  %v962_v41 = vadd.f32 %v961_v39, %v960_v34  ;;  %v899_v42 = vpop.f32.mrf.mxu0 }
  0xf8   :  { %v963_v43 = vpop.f32.mrf.mxu1 }
  0xf9   :  { %v770_v44 = vmax.f32 %v754_v40, 0.0  ;;  %v647_v45 = vadd.f32 %v962_v41, %v898_v38  ;;  %v900_v46 = vpop.f32.mrf.mxu0 }
  0xfa   :  { %v901_v47 = vadd.f32 %v900_v46, %v899_v42  ;;  %v964_v48 = vpop.f32.mrf.mxu1 }
  0xfb   :  { %786 = vst [vmem:[%s1360_s3 + $0x18] sm:$0xff] %v770_v44  ;;  %v755_v49 = vadd.f32 %v1291_v7, %v647_v45  ;;  %v965_v50 = vadd.f32 %v964_v48, %v963_v43  ;;  %v902_v51 = vpop.f32.mrf.mxu0 }
  0xfc   :  { %v966_v52 = vpop.f32.mrf.mxu1 }
  0xfd   :  { %v771_v53 = vmax.f32 %v755_v49, 0.0  ;;  %v650_v54 = vadd.f32 %v965_v50, %v901_v47  ;;  %v903_v55 = vpop.f32.mrf.mxu0 }
  0xfe   :  { %v904_v56 = vadd.f32 %v903_v55, %v902_v51  ;;  %v967_v57 = vpop.f32.mrf.mxu1 }
  0xff   :  { %787 = vst [vmem:[%s1360_s3 + $0x20] sm:$0xff] %v771_v53  ;;  %v756_v58 = vadd.f32 %v1291_v7, %v650_v54  ;;  %v968_v59 = vadd.f32 %v967_v57, %v966_v52  ;;  %v905_v60 = vpop.f32.mrf.mxu0 }
 0x100   :  { %v969_v61 = vpop.f32.mrf.mxu1 }
 0x101   :  { %v772_v62 = vmax.f32 %v756_v58, 0.0  ;;  %v655_v63 = vadd.f32 %v968_v59, %v904_v56  ;;  %v906_v0 = vpop.f32.mrf.mxu0 }
 0x102   :  { %v907_v1 = vadd.f32 %v906_v0, %v905_v60  ;;  %v970_v2 = vpop.f32.mrf.mxu1 }
 0x103   :  { %788 = vst [vmem:[%s1360_s3 + $0x28] sm:$0xff] %v772_v62  ;;  %v757_v3 = vadd.f32 %v1291_v7, %v655_v63  ;;  %v971_v4 = vadd.f32 %v970_v2, %v969_v61  ;;  %v908_v5 = vpop.f32.mrf.mxu0 }
 0x104   :  { %v972_v6 = vpop.f32.mrf.mxu1 }
 0x105   :  { %v773_v8 = vmax.f32 %v757_v3, 0.0  ;;  %v658_v9 = vadd.f32 %v971_v4, %v907_v1  ;;  %v909_v10 = vpop.f32.mrf.mxu0 }
 0x106   :  { %v910_v11 = vadd.f32 %v909_v10, %v908_v5  ;;  %v973_v12 = vpop.f32.mrf.mxu1 }
 0x107   :  { %789 = vst [vmem:[%s1360_s3 + $0x30] sm:$0xff] %v773_v8  ;;  %v758_v13 = vadd.f32 %v1291_v7, %v658_v9  ;;  %v974_v14 = vadd.f32 %v973_v12, %v972_v6  ;;  %v911_v15 = vpop.f32.mrf.mxu0 }
 0x108   :  { %v975_v16 = vpop.f32.mrf.mxu1 }
 0x109   :  { %v774_v17 = vmax.f32 %v758_v13, 0.0  ;;  %v663_v18 = vadd.f32 %v974_v14, %v910_v11  ;;  %v912_v19 = vpop.f32.mrf.mxu0 }
 0x10a   :  { %v913_v20 = vadd.f32 %v912_v19, %v911_v15  ;;  %v976_v21 = vpop.f32.mrf.mxu1 }
 0x10b   :  { %790 = vst [vmem:[%s1360_s3 + $0x38] sm:$0xff] %v774_v17  ;;  %v759_v22 = vadd.f32 %v1291_v7, %v663_v18  ;;  %v977_v23 = vadd.f32 %v976_v21, %v975_v16  ;;  %v914_v24 = vpop.f32.mrf.mxu0 }
 0x10c   :  { %v978_v25 = vpop.f32.mrf.mxu1 }
 0x10d   :  { %v775_v26 = vmax.f32 %v759_v22, 0.0  ;;  %v666_v27 = vadd.f32 %v977_v23, %v913_v20  ;;  %v915_v28 = vpop.f32.mrf.mxu0 }
 0x10e   :  { %v916_v29 = vadd.f32 %v915_v28, %v914_v24  ;;  %v979_v30 = vpop.f32.mrf.mxu1 }
 0x10f   :  { %791 = vst [vmem:[%s1360_s3 + $0x40] sm:$0xff] %v775_v26  ;;  %v760_v31 = vadd.f32 %v1291_v7, %v666_v27  ;;  %v980_v32 = vadd.f32 %v979_v30, %v978_v25  ;;  %v917_v33 = vpop.f32.mrf.mxu0 }
 0x110   :  { %v981_v34 = vpop.f32.mrf.mxu1 }
 0x111   :  { %v776_v35 = vmax.f32 %v760_v31, 0.0  ;;  %v671_v36 = vadd.f32 %v980_v32, %v916_v29  ;;  %v918_v37 = vpop.f32.mrf.mxu0 }
 0x112   :  { %v919_v38 = vadd.f32 %v918_v37, %v917_v33  ;;  %v982_v39 = vpop.f32.mrf.mxu1 }
 0x113   :  { %792 = vst [vmem:[%s1360_s3 + $0x48] sm:$0xff] %v776_v35  ;;  %v761_v40 = vadd.f32 %v1291_v7, %v671_v36  ;;  %v983_v41 = vadd.f32 %v982_v39, %v981_v34  ;;  %v920_v42 = vpop.f32.mrf.mxu0 }
 0x114   :  { %v984_v43 = vpop.f32.mrf.mxu1 }
 0x115   :  { %v777_v44 = vmax.f32 %v761_v40, 0.0  ;;  %v674_v45 = vadd.f32 %v983_v41, %v919_v38  ;;  %v921_v46 = vpop.f32.mrf.mxu0 }
 0x116   :  { %v922_v47 = vadd.f32 %v921_v46, %v920_v42  ;;  %v985_v48 = vpop.f32.mrf.mxu1 }
 0x117   :  { %793 = vst [vmem:[%s1360_s3 + $0x50] sm:$0xff] %v777_v44  ;;  %v762_v49 = vadd.f32 %v1291_v7, %v674_v45  ;;  %v986_v50 = vadd.f32 %v985_v48, %v984_v43  ;;  %v923_v51 = vpop.f32.mrf.mxu0 }
 0x118   :  { %v987_v52 = vpop.f32.mrf.mxu1 }
 0x119   :  { %v778_v53 = vmax.f32 %v762_v49, 0.0  ;;  %v679_v54 = vadd.f32 %v986_v50, %v922_v47  ;;  %v924_v55 = vpop.f32.mrf.mxu0 }
 0x11a   :  { %v925_v56 = vadd.f32 %v924_v55, %v923_v51  ;;  %v988_v57 = vpop.f32.mrf.mxu1 }
 0x11b   :  { %794 = vst [vmem:[%s1360_s3 + $0x58] sm:$0xff] %v778_v53  ;;  %v763_v58 = vadd.f32 %v1291_v7, %v679_v54  ;;  %v989_v59 = vadd.f32 %v988_v57, %v987_v52  ;;  %v926_v60 = vpop.f32.mrf.mxu0 }
 0x11c   :  { %v990_v61 = vpop.f32.mrf.mxu1 }
 0x11d   :  { %v779_v62 = vmax.f32 %v763_v58, 0.0  ;;  %v682_v63 = vadd.f32 %v989_v59, %v925_v56  ;;  %v927_v0 = vpop.f32.mrf.mxu0 }
 0x11e   :  { %v928_v1 = vadd.f32 %v927_v0, %v926_v60  ;;  %v991_v2 = vpop.f32.mrf.mxu1 }
 0x11f   :  { %795 = vst [vmem:[%s1360_s3 + $0x60] sm:$0xff] %v779_v62  ;;  %v764_v3 = vadd.f32 %v1291_v7, %v682_v63  ;;  %v992_v4 = vadd.f32 %v991_v2, %v990_v61  ;;  %v929_v5 = vpop.f32.mrf.mxu0 }
 0x120   :  { %v993_v6 = vpop.f32.mrf.mxu1 }
 0x121   :  { %v780_v8 = vmax.f32 %v764_v3, 0.0  ;;  %v687_v9 = vadd.f32 %v992_v4, %v928_v1  ;;  %v930_v10 = vpop.f32.mrf.mxu0 }
 0x122   :  { %v931_v11 = vadd.f32 %v930_v10, %v929_v5  ;;  %v994_v12 = vpop.f32.mrf.mxu1 }
 0x123   :  { %796 = vst [vmem:[%s1360_s3 + $0x68] sm:$0xff] %v780_v8  ;;  %v765_v13 = vadd.f32 %v1291_v7, %v687_v9  ;;  %v995_v14 = vadd.f32 %v994_v12, %v993_v6 }
 0x125   :  { %v781_v15 = vmax.f32 %v765_v13, 0.0  ;;  %v690_v16 = vadd.f32 %v995_v14, %v931_v11 }
 0x127   :  { %797 = vst [vmem:[%s1360_s3 + $0x70] sm:$0xff] %v781_v15  ;;  %v766_v17 = vadd.f32 %v1291_v7, %v690_v16 }
 0x129   :  { %v782_v18 = vmax.f32 %v766_v17, 0.0 }
 0x12b   :  { %798 = vst [vmem:[%s1360_s3 + $0x78] sm:$0xff] %v782_v18 }

// kernel: _lambda_.6
= control target key start
LH: loop header
LB: loop body
LE: loop exit
PB: predicated region body
PF: predicated region fallthrough
CT: control target
= control target key end

     0   :  { %s310_s1 = inlined_call_operand.vmem [shape: bf16[128,128], index: 1, kind: input, shape index: {}]   ;;  %s311_s0 = inlined_call_operand.vmem [shape: bf16[32,128], index: 0, kind: input, shape index: {}]   ;;  %s312_s2 = inlined_call_operand.vmem [shape: f32[1,128], index: 2, kind: input, shape index: {}]   ;;  %s313_s3 = inlined_call_operand.vmem [shape: f32[32,128], index: 3, kind: output, shape index: {}]  }
   0x1   :  { %v235_v0 = vld [vmem:[%s310_s1 + $0x38] sm:$0xff]   ;;  %v236_v1 = vld [vmem:[%s310_s1 + $0x30] sm:$0xff]   ;;  %v237_v2 = vld [vmem:[%s310_s1 + $0x28] sm:$0xff]  }
   0x2   :  { %215 = vmatprep.subr.bf16.mxu0 %v235_v0  ;;  %v238_v3 = vld [vmem:[%s310_s1 + $0x20] sm:$0xff]   ;;  %v239_v5 = vld [vmem:[%s310_s1 + $0x18] sm:$0xff]   ;;  %v240_v6 = vld [vmem:[%s310_s1 + $0x10] sm:$0xff]  }
   0x3   :  { %216 = vmatpush3.bf16.msra.mxu0 %v235_v0  ;;  %v243_v4 = vld [vmem:[%s311_s0] sm:$0xff]   ;;  %v241_v7 = vld [vmem:[%s310_s1 + $0x8] sm:$0xff]  }
   0x4   :  { %217 = vmatprep.subr.bf16.mxu0 %v236_v1  ;;  %231 = vmatprep.mubr.bf16.mxu0 %v243_v4  ;;  %v242_v8 = vld [vmem:[%s310_s1] sm:$0xff]   ;;  %v244_v9 = vld [vmem:[%s311_s0 + $0x8] sm:$0xff]  }
   0x5   :  { %v204_v10 = vld [vmem:[%s312_s2] ss:$0 sm:$0xff] }
   0x7   :  { %218 = vmatpush3.bf16.msra.mxu0 %v236_v1 }
   0x8   :  { %219 = vmatprep.subr.bf16.mxu0 %v237_v2 }
   0xb   :  { %220 = vmatpush3.bf16.msra.mxu0 %v237_v2 }
   0xc   :  { %221 = vmatprep.subr.bf16.mxu0 %v238_v3 }
   0xf   :  { %222 = vmatpush3.bf16.msra.mxu0 %v238_v3 }
  0x10   :  { %223 = vmatprep.subr.bf16.mxu0 %v239_v5 }
  0x13   :  { %224 = vmatpush3.bf16.msra.mxu0 %v239_v5 }
  0x14   :  { %225 = vmatprep.subr.bf16.mxu0 %v240_v6 }
  0x17   :  { %226 = vmatpush3.bf16.msra.mxu0 %v240_v6 }
  0x18   :  { %227 = vmatprep.subr.bf16.mxu0 %v241_v7 }
  0x1b   :  { %228 = vmatpush3.bf16.msra.mxu0 %v241_v7 }
  0x1c   :  { %229 = vmatprep.subr.bf16.mxu0 %v242_v8 }
  0x1f   :  { %230 = vmatpush3.bf16.msra.mxu0 %v242_v8 }
  0x22   :  { %232 = vmatmul.mubr.bf16.vlgmr.msra.gmra.mxu0 %v244_v9 }
  0xe2   :  { %v233_v11 = vpop.f32.mrf.mxu0 }
  0xe3   :  { %v180_v12 = vadd.f32 %v233_v11, %v204_v10 }
  0xe4   :  { %v141_v13 = vpop.f32.mrf.mxu0 }
  0xe5   :  { %v184_v14 = vmax.f32 %v180_v12, 0.0  ;;  %v178_v15 = vadd.f32 %v204_v10, %v141_v13 }
  0xe6   :  { %v234_v16 = vpop.f32.mrf.mxu0 }
  0xe7   :  { %188 = vst [vmem:[%s313_s3 + $0x10] sm:$0xff] %v184_v14  ;;  %v182_v17 = vmax.f32 %v178_v15, 0.0  ;;  %v181_v18 = vadd.f32 %v234_v16, %v204_v10 }
  0xe8   :  { %v144_v19 = vpop.f32.mrf.mxu0 }
  0xe9   :  { %186 = vst [vmem:[%s313_s3] sm:$0xff] %v182_v17  ;;  %v185_v20 = vmax.f32 %v181_v18, 0.0  ;;  %v179_v21 = vadd.f32 %v204_v10, %v144_v19 }
  0xeb   :  { %189 = vst [vmem:[%s313_s3 + $0x18] sm:$0xff] %v185_v20  ;;  %v183_v22 = vmax.f32 %v179_v21, 0.0 }
  0xed   :  { %187 = vst [vmem:[%s313_s3 + $0x8] sm:$0xff] %v183_v22 }

// kernel: _lambda_.7
= control target key start
LH: loop header
LB: loop body
LE: loop exit
PB: predicated region body
PF: predicated region fallthrough
CT: control target
= control target key end

     0   :  { %s448_s1 = inlined_call_operand.vmem [shape: bf16[256,128], index: 1, kind: input, shape index: {}]   ;;  %s449_s0 = inlined_call_operand.vmem [shape: bf16[32,256], index: 0, kind: input, shape index: {}]   ;;  %s450_s2 = inlined_call_operand.vmem [shape: f32[1,128], index: 2, kind: input, shape index: {}]   ;;  %s451_s3 = inlined_call_operand.vmem [shape: f32[32,128], index: 3, kind: output, shape index: {}]  }
   0x1   :  { %v331_v0 = vld [vmem:[%s448_s1 + $0x78] sm:$0xff]   ;;  %v333_v2 = vld [vmem:[%s448_s1 + $0x70] sm:$0xff]   ;;  %v335_v4 = vld [vmem:[%s448_s1 + $0x68] sm:$0xff]  }
   0x2   :  { %v332_v1 = vld [vmem:[%s448_s1 + $0x38] sm:$0xff]   ;;  %287 = vmatprep.subr.bf16.mxu0 %v331_v0  ;;  %315 = vmatprep.subr.bf16.mxu1 %v331_v0  ;;  %v334_v3 = vld [vmem:[%s448_s1 + $0x30] sm:$0xff]   ;;  %v336_v5 = vld [vmem:[%s448_s1 + $0x28] sm:$0xff]  }
   0x3   :  { %288 = vmatpush3.bf16.msra.mxu0 %v332_v1  ;;  %323 = vmatpush3.bf16.msra.mxu1 %v332_v1  ;;  %v337_v6 = vld [vmem:[%s448_s1 + $0x60] sm:$0xff]   ;;  %v339_v8 = vld [vmem:[%s448_s1 + $0x58] sm:$0xff]   ;;  %v341_v10 = vld [vmem:[%s448_s1 + $0x50] sm:$0xff]  }
   0x4   :  { %289 = vmatprep.subr.bf16.mxu0 %v333_v2  ;;  %316 = vmatprep.subr.bf16.mxu1 %v333_v2  ;;  %v338_v7 = vld [vmem:[%s448_s1 + $0x20] sm:$0xff]   ;;  %v340_v9 = vld [vmem:[%s448_s1 + $0x18] sm:$0xff]   ;;  %v342_v13 = vld [vmem:[%s448_s1 + $0x10] sm:$0xff]  }
   0x5   :  { %v349_v11 = vld [vmem:[%s449_s0 + $0x4] ss:$8 sps:$4 sm:$0xff]   ;;  %v352_v12 = vld [vmem:[%s449_s0 + $0x14] ss:$8 sps:$4 sm:$0xff]   ;;  %v347_v18 = vld [vmem:[%s449_s0] ss:$8 sps:$4 sm:$0xff]  }
   0x6   :  { %v343_v14 = vld [vmem:[%s448_s1 + $0x48] sm:$0xff]   ;;  %211 = vmatprep.mubr.bf16.mxu0 %v349_v11  ;;  %219 = vmatprep.mubr.bf16.mxu1 %v352_v12  ;;  %v345_v16 = vld [vmem:[%s448_s1 + $0x40] sm:$0xff]   ;;  %v350_v19 = vld [vmem:[%s449_s0 + $0x10] ss:$8 sps:$4 sm:$0xff]  }
   0x7   :  { %290 = vmatpush3.bf16.msra.mxu0 %v334_v3  ;;  %324 = vmatpush3.bf16.msra.mxu1 %v334_v3  ;;  %v344_v15 = vld [vmem:[%s448_s1 + $0x8] sm:$0xff]   ;;  %v346_v17 = vld [vmem:[%s448_s1] sm:$0xff]  }
   0x8   :  { %291 = vmatprep.subr.bf16.mxu0 %v335_v4  ;;  %317 = vmatprep.subr.bf16.mxu1 %v335_v4  ;;  %v286_v23 = vld [vmem:[%s450_s2] ss:$0 sm:$0xff] }
   0xb   :  { %292 = vmatpush3.bf16.msra.mxu0 %v336_v5  ;;  %325 = vmatpush3.bf16.msra.mxu1 %v336_v5 }
   0xc   :  { %293 = vmatprep.subr.bf16.mxu0 %v337_v6  ;;  %318 = vmatprep.subr.bf16.mxu1 %v337_v6 }
   0xf   :  { %294 = vmatpush3.bf16.msra.mxu0 %v338_v7  ;;  %326 = vmatpush3.bf16.msra.mxu1 %v338_v7 }
  0x10   :  { %295 = vmatprep.subr.bf16.mxu0 %v339_v8  ;;  %319 = vmatprep.subr.bf16.mxu1 %v339_v8 }
  0x13   :  { %296 = vmatpush3.bf16.msra.mxu0 %v340_v9  ;;  %327 = vmatpush3.bf16.msra.mxu1 %v340_v9 }
  0x14   :  { %297 = vmatprep.subr.bf16.mxu0 %v341_v10  ;;  %320 = vmatprep.subr.bf16.mxu1 %v341_v10 }
  0x17   :  { %298 = vmatpush3.bf16.msra.mxu0 %v342_v13  ;;  %328 = vmatpush3.bf16.msra.mxu1 %v342_v13 }
  0x18   :  { %299 = vmatprep.subr.bf16.mxu0 %v343_v14  ;;  %321 = vmatprep.subr.bf16.mxu1 %v343_v14 }
  0x1b   :  { %300 = vmatpush3.bf16.msra.mxu0 %v344_v15  ;;  %329 = vmatpush3.bf16.msra.mxu1 %v344_v15 }
  0x1c   :  { %301 = vmatprep.subr.bf16.mxu0 %v345_v16  ;;  %322 = vmatprep.subr.bf16.mxu1 %v345_v16 }
  0x1f   :  { %302 = vmatpush3.bf16.msra.mxu0 %v346_v17  ;;  %330 = vmatpush3.bf16.msra.mxu1 %v346_v17 }
  0x22   :  { %212 = vmatmul.mubr.bf16.vlgmr.msra.gmra.mxu0 %v347_v18  ;;  %220 = vmatmul.mubr.bf16.vlgmr.msra.gmra.mxu1 %v350_v19 }
  0xe2   :  { %v303_v20 = vpop.f32.mrf.mxu0  ;;  %v309_v21 = vpop.f32.mrf.mxu1 }
  0xe4   :  { %v304_v22 = vpop.f32.mrf.mxu0  ;;  %v310_v24 = vpop.f32.mrf.mxu1 }
  0xe5   :  { %v305_v25 = vadd.f32 %v304_v22, %v303_v20  ;;  %v311_v26 = vadd.f32 %v310_v24, %v309_v21 }
  0xe6   :  { %v306_v27 = vpop.f32.mrf.mxu0  ;;  %v312_v28 = vpop.f32.mrf.mxu1 }
  0xe7   :  { %v250_v29 = vadd.f32 %v305_v25, %v286_v23  ;;  %v252_v30 = vadd.f32 %v311_v26, %v286_v23 }
  0xe8   :  { %v307_v31 = vpop.f32.mrf.mxu0  ;;  %v313_v32 = vpop.f32.mrf.mxu1 }
  0xe9   :  { %v254_v33 = vmax.f32 %v250_v29, 0.0  ;;  %v256_v34 = vmax.f32 %v252_v30, 0.0  ;;  %v308_v35 = vadd.f32 %v307_v31, %v306_v27  ;;  %v314_v36 = vadd.f32 %v313_v32, %v312_v28 }
  0xeb   :  { %258 = vst [vmem:[%s451_s3] sm:$0xff] %v254_v33  ;;  %260 = vst [vmem:[%s451_s3 + $0x10] sm:$0xff] %v256_v34  ;;  %v251_v37 = vadd.f32 %v308_v35, %v286_v23  ;;  %v253_v38 = vadd.f32 %v314_v36, %v286_v23 }
  0xed   :  { %v255_v39 = vmax.f32 %v251_v37, 0.0  ;;  %v257_v40 = vmax.f32 %v253_v38, 0.0 }
  0xef   :  { %259 = vst [vmem:[%s451_s3 + $0x8] sm:$0xff] %v255_v39  ;;  %261 = vst [vmem:[%s451_s3 + $0x18] sm:$0xff] %v257_v40 }

// kernel: _lambda_.8
= control target key start
LH: loop header
LB: loop body
LE: loop exit
PB: predicated region body
PF: predicated region fallthrough
CT: control target
= control target key end

     0   :  { %s373_s1 = inlined_call_operand.vmem [shape: bf16[256,128], index: 1, kind: input, shape index: {}]   ;;  %s374_s0 = inlined_call_operand.vmem [shape: bf16[16,256], index: 0, kind: input, shape index: {}]   ;;  %s375_s2 = inlined_call_operand.vmem [shape: f32[1,128], index: 2, kind: input, shape index: {}]   ;;  %s376_s3 = inlined_call_operand.vmem [shape: f32[16,128], index: 3, kind: output, shape index: {}]  }
   0x1   :  { %v271_v0 = vld [vmem:[%s373_s1 + $0x78] sm:$0xff]   ;;  %v273_v2 = vld [vmem:[%s373_s1 + $0x70] sm:$0xff]   ;;  %v275_v4 = vld [vmem:[%s373_s1 + $0x68] sm:$0xff]  }
   0x2   :  { %v272_v1 = vld [vmem:[%s373_s1 + $0x38] sm:$0xff]   ;;  %249 = vmatprep.subr.bf16.mxu0 %v271_v0  ;;  %v274_v3 = vld [vmem:[%s373_s1 + $0x30] sm:$0xff]   ;;  %v276_v5 = vld [vmem:[%s373_s1 + $0x28] sm:$0xff]  }
   0x3   :  { %250 = vmatpush3.bf16.msra.mxu0 %v272_v1  ;;  %v277_v6 = vld [vmem:[%s373_s1 + $0x60] sm:$0xff]   ;;  %v279_v8 = vld [vmem:[%s373_s1 + $0x58] sm:$0xff]   ;;  %v281_v10 = vld [vmem:[%s373_s1 + $0x50] sm:$0xff]  }
   0x4   :  { %251 = vmatprep.subr.bf16.mxu0 %v273_v2  ;;  %v278_v7 = vld [vmem:[%s373_s1 + $0x20] sm:$0xff]   ;;  %v280_v9 = vld [vmem:[%s373_s1 + $0x18] sm:$0xff]   ;;  %v282_v12 = vld [vmem:[%s373_s1 + $0x10] sm:$0xff]  }
   0x5   :  { %v289_v11 = vld [vmem:[%s374_s0 + $0x4] ss:$8 sps:$4 sm:$0xff]   ;;  %v287_v17 = vld [vmem:[%s374_s0] ss:$8 sps:$4 sm:$0xff]  }
   0x6   :  { %195 = vmatprep.mubr.bf16.mxu0 %v289_v11  ;;  %v283_v13 = vld [vmem:[%s373_s1 + $0x48] sm:$0xff]   ;;  %v285_v15 = vld [vmem:[%s373_s1 + $0x40] sm:$0xff]  }
   0x7   :  { %252 = vmatpush3.bf16.msra.mxu0 %v274_v3  ;;  %v284_v14 = vld [vmem:[%s373_s1 + $0x8] sm:$0xff]   ;;  %v286_v16 = vld [vmem:[%s373_s1] sm:$0xff]  }
   0x8   :  { %253 = vmatprep.subr.bf16.mxu0 %v275_v4  ;;  %v248_v20 = vld [vmem:[%s375_s2] ss:$0 sm:$0xff] }
   0xb   :  { %254 = vmatpush3.bf16.msra.mxu0 %v276_v5 }
   0xc   :  { %255 = vmatprep.subr.bf16.mxu0 %v277_v6 }
   0xf   :  { %256 = vmatpush3.bf16.msra.mxu0 %v278_v7 }
  0x10   :  { %257 = vmatprep.subr.bf16.mxu0 %v279_v8 }
  0x13   :  { %258 = vmatpush3.bf16.msra.mxu0 %v280_v9 }
  0x14   :  { %259 = vmatprep.subr.bf16.mxu0 %v281_v10 }
  0x17   :  { %260 = vmatpush3.bf16.msra.mxu0 %v282_v12 }
  0x18   :  { %261 = vmatprep.subr.bf16.mxu0 %v283_v13 }
  0x1b   :  { %262 = vmatpush3.bf16.msra.mxu0 %v284_v14 }
  0x1c   :  { %263 = vmatprep.subr.bf16.mxu0 %v285_v15 }
  0x1f   :  { %264 = vmatpush3.bf16.msra.mxu0 %v286_v16 }
  0x22   :  { %196 = vmatmul.mubr.bf16.vlgmr.msra.gmra.mxu0 %v287_v17 }
  0xe2   :  { %v265_v18 = vpop.f32.mrf.mxu0 }
  0xe4   :  { %v266_v19 = vpop.f32.mrf.mxu0 }
  0xe5   :  { %v267_v21 = vadd.f32 %v266_v19, %v265_v18 }
  0xe6   :  { %v268_v22 = vpop.f32.mrf.mxu0 }
  0xe7   :  { %v220_v23 = vadd.f32 %v267_v21, %v248_v20 }
  0xe8   :  { %v269_v24 = vpop.f32.mrf.mxu0 }
  0xe9   :  { %v222_v25 = vmax.f32 %v220_v23, 0.0  ;;  %v270_v26 = vadd.f32 %v269_v24, %v268_v22 }
  0xeb   :  { %224 = vst [vmem:[%s376_s3] sm:$0xff] %v222_v25  ;;  %v221_v27 = vadd.f32 %v270_v26, %v248_v20 }
  0xed   :  { %v223_v28 = vmax.f32 %v221_v27, 0.0 }
  0xef   :  { %225 = vst [vmem:[%s376_s3 + $0x8] sm:$0xff] %v223_v28 }

// kernel: _lambda_.9
= control target key start
LH: loop header
LB: loop body
LE: loop exit
PB: predicated region body
PF: predicated region fallthrough
CT: control target
= control target key end

     0   :  { %v212_v0 = vmov 0.0   ;;  %vm213_vm0 = vmmov 0   ;;  %s270_s1 = inlined_call_operand.vmem [shape: bf16[128,128], index: 1, kind: input, shape index: {}]   ;;  %s271_s0 = inlined_call_operand.vmem [shape: bf16[16,128], index: 0, kind: input, shape index: {}]   ;;  %s272_s2 = inlined_call_operand.vmem [shape: f32[1,128], index: 2, kind: input, shape index: {}]   ;;  %s273_s3 = inlined_call_operand.vmem [shape: f32[16,128], index: 3, kind: output, shape index: {}]  }
   0x1   :  { %181 = vmatprep.subr.bf16.mxu0 %v212_v0  ;;  %v203_v1 = vld [vmem:[%s270_s1 + $0x38] sm:$0xff]   ;;  %197 = vmatprep.mubr.msk.bf16.mxu0 %vm213_vm0, %v212_v0  ;;  %v204_v2 = vld [vmem:[%s270_s1 + $0x30] sm:$0xff]   ;;  %v205_v3 = vld [vmem:[%s270_s1 + $0x28] sm:$0xff]  }
   0x2   :  { %182 = vmatpush3.bf16.msra.mxu0 %v203_v1  ;;  %v206_v4 = vld [vmem:[%s270_s1 + $0x20] sm:$0xff]   ;;  %v207_v5 = vld [vmem:[%s270_s1 + $0x18] sm:$0xff]   ;;  %v208_v6 = vld [vmem:[%s270_s1 + $0x10] sm:$0xff]  }
   0x3   :  { %183 = vmatprep.subr.bf16.mxu0 %v212_v0  ;;  %v209_v7 = vld [vmem:[%s270_s1 + $0x8] sm:$0xff]   ;;  %v210_v8 = vld [vmem:[%s270_s1] sm:$0xff]  }
   0x4   :  { %v211_v9 = vld [vmem:[%s271_s0] sm:$0xff]  }
   0x5   :  { %v171_v10 = vld [vmem:[%s272_s2] ss:$0 sm:$0xff] }
   0x6   :  { %184 = vmatpush3.bf16.msra.mxu0 %v204_v2 }
   0x7   :  { %185 = vmatprep.subr.bf16.mxu0 %v212_v0 }
   0xa   :  { %186 = vmatpush3.bf16.msra.mxu0 %v205_v3 }
   0xb   :  { %187 = vmatprep.subr.bf16.mxu0 %v212_v0 }
   0xe   :  { %188 = vmatpush3.bf16.msra.mxu0 %v206_v4 }
   0xf   :  { %189 = vmatprep.subr.bf16.mxu0 %v212_v0 }
  0x12   :  { %190 = vmatpush3.bf16.msra.mxu0 %v207_v5 }
  0x13   :  { %191 = vmatprep.subr.bf16.mxu0 %v212_v0 }
  0x16   :  { %192 = vmatpush3.bf16.msra.mxu0 %v208_v6 }
  0x17   :  { %193 = vmatprep.subr.bf16.mxu0 %v212_v0 }
  0x1a   :  { %194 = vmatpush3.bf16.msra.mxu0 %v209_v7 }
  0x1b   :  { %195 = vmatprep.subr.bf16.mxu0 %v212_v0 }
  0x1e   :  { %196 = vmatpush3.bf16.msra.mxu0 %v210_v8 }
  0x21   :  { %198 = vmatmul.mubr.bf16.vlgmr.msra.gmra.mxu0 %v211_v9 }
  0xe1   :  { %v129_v11 = vpop.f32.mrf.mxu0 }
  0xe2   :  { %v152_v12 = vadd.f32 %v171_v10, %v129_v11 }
  0xe3   :  { %v199_v13 = vpop.f32.mrf.mxu0 }
  0xe4   :  { %v154_v14 = vmax.f32 %v152_v12, 0.0 }
  0xe5   :  { %v132_v15 = vpop.f32.mrf.mxu0 }
  0xe6   :  { %156 = vst [vmem:[%s273_s3] sm:$0xff] %v154_v14  ;;  %v153_v16 = vadd.f32 %v171_v10, %v132_v15 }
  0xe7   :  { %v200_v17 = vpop.f32.mrf.mxu0 }
  0xe8   :  { %v155_v18 = vmax.f32 %v153_v16, 0.0 }
  0xea   :  { %157 = vst [vmem:[%s273_s3 + $0x8] sm:$0xff] %v155_v18 }

</bundles_post_ra>
